<compile_context>
chip_gen: v7x
topology: tpu7x:2x2x1
jax: 0.10.0
libtpu: 0.0.40
codegen_flags: <defaults>
</compile_context>

<pallas_src>
import jax
import jax.numpy as jnp
from jax.experimental import pallas as pl
from jax.experimental.pallas import tpu as pltpu


def lstm_linear_kernel(x_ref, wih_ref, whh_ref, b_ref, wlin_ref, blin_ref, out_ref):
    # x_ref:    (T, I)   one sequence (leading grid dim squeezed)
    # wih_ref:  (I, 4H)  input->gate weights, gate order (i, f, o, g), f32
    # whh_ref:  (H, 4H)  hidden->gate weights, gate order (i, f, o, g), bf16
    # b_ref:    (1, 4H)  b_ih + b_hh,          gate order (i, f, o, g), f32
    # wlin_ref: (O, H)   linear head weight (PyTorch layout), f32
    # blin_ref: (1, O)   linear head bias, f32
    # out_ref:  (1, O)   prediction for this sequence
    T, I = x_ref.shape
    H = whh_ref.shape[0]
    O = out_ref.shape[1]

    x = x_ref[...]
    wih = wih_ref[...]
    whh = whh_ref[...]
    b = b_ref[...]

    # Hoisted input projection (off the serial critical path):
    # gates_x[t] = x_t @ W_ih + (b_ih + b_hh).
    if I == 1:
        # Rank-1 outer product -> VPU broadcast multiply, no MXU push/pop.
        gates_x = x * wih + b                                       # (T, 4H)
    else:
        gates_x = jnp.dot(x, wih, preferred_element_type=jnp.float32) + b

    h = jnp.zeros((1, H), jnp.float32)
    c = jnp.zeros((1, H), jnp.float32)

    # Statically unrolled recurrence (T small & static): one bf16 MXU op per
    # step, two contiguous EUP activations, fp32 state math.
    for t in range(T):
        gates = (
            jnp.dot(h.astype(jnp.bfloat16), whh,
                    preferred_element_type=jnp.float32)
            + gates_x[t:t + 1, :]
        )                                                           # (1, 4H)
        sig = jax.nn.sigmoid(gates[:, : 3 * H])   # contiguous (1, 3H): i, f, o
        i_g = sig[:, 0 * H:1 * H]
        f_g = sig[:, 1 * H:2 * H]
        o_g = sig[:, 2 * H:3 * H]
        g_g = jnp.tanh(gates[:, 3 * H:])          # contiguous (1, H)
        c = f_g * c + i_g * g_g
        h = o_g * jnp.tanh(c)

    # Linear head.
    if O == 1:
        out_ref[...] = (
            jnp.sum(h * wlin_ref[...], axis=-1, keepdims=True) + blin_ref[...]
        )
    else:
        out_ref[...] = (
            jax.lax.dot_general(h, wlin_ref[...],
                                dimension_numbers=(((1,), (1,)), ((), ())),
                                preferred_element_type=jnp.float32)
            + blin_ref[...]
        )


def prepare_params(params):
    """One-time weight prep: transpose to row-major-matmul layout, reorder the
    gate axis (i, f, g, o) -> (i, f, o, g), combine biases, and cast the
    recurrence weight to bf16 for the MXU."""
    w_ih, w_hh, b_ih, b_hh, w_lin, b_lin = params
    H = w_hh.shape[1]
    O = w_lin.shape[0]
    perm = jnp.concatenate([
        jnp.arange(0, H),          # i
        jnp.arange(H, 2 * H),      # f
        jnp.arange(3 * H, 4 * H),  # o
        jnp.arange(2 * H, 3 * H),  # g
    ])
    wih_t = jnp.transpose(w_ih).astype(jnp.float32)[:, perm]              # (I, 4H)
    whh_t = (jnp.transpose(w_hh).astype(jnp.float32)[:, perm]
             .astype(jnp.bfloat16))                                       # (H, 4H) bf16
    b_sum = (b_ih + b_hh).astype(jnp.float32)[perm].reshape(1, 4 * H)      # (1, 4H)
    wlin = w_lin.astype(jnp.float32).reshape(O, H)                         # (O, H)
    blin = b_lin.astype(jnp.float32).reshape(1, O)                         # (1, O)
    return (wih_t, whh_t, b_sum, wlin, blin)


@jax.jit
def lstm_linear_evaluate(seqs, prepped):
    """seqs: (S, T, I) f32 — S independent sequences, each run with zero
    initial (h, c) exactly as in Model.fit()/evaluate().  Returns (S, O)."""
    wih_t, whh_t, b_sum, wlin, blin = prepped
    S, T, I = seqs.shape
    H = whh_t.shape[0]
    O = wlin.shape[0]

    def full_spec(shape):
        return pl.BlockSpec(shape, lambda s: (0,) * len(shape))

    out = pl.pallas_call(
        lstm_linear_kernel,
        out_shape=jax.ShapeDtypeStruct((S, 1, O), jnp.float32),
        grid=(S,),
        in_specs=[
            # One sequence per grid step; leading dim squeezed away.
            pl.BlockSpec((None, T, I), lambda s: (s, 0, 0)),
            # Weights: full-array blocks, constant index map -> stay resident
            # in VMEM across the whole grid (one DMA per call).
            full_spec((I, 4 * H)),
            full_spec((H, 4 * H)),
            full_spec((1, 4 * H)),
            full_spec((O, H)),
            full_spec((1, O)),
        ],
        out_specs=pl.BlockSpec((None, 1, O), lambda s: (s, 0, 0)),
        compiler_params=pltpu.CompilerParams(
            # Sequences are independent: shard the grid across v7x's 2 TCs.
            dimension_semantics=("parallel",)),
    )(seqs, wih_t, whh_t, b_sum, wlin, blin)
    return out.reshape(S, O)


@jax.jit
def lstm_linear_forward(x_btI, prepped):
    """Model.forward with zero initial (h, c): x_btI is (B, T, I) batch_first.
    predictions[-1] depends only on the last batch row, so only that row is
    run.  Returns shape (out_size,)."""
    B = x_btI.shape[0]
    return lstm_linear_evaluate(x_btI[B - 1:B].astype(jnp.float32), prepped)[0]


def init_params(key, in_size, hid, out_size):
    """Deterministic init mimicking PyTorch's U(-1/sqrt(hid), 1/sqrt(hid))."""
    k = 1.0 / jnp.sqrt(jnp.float32(hid))
    keys = jax.random.split(key, 6)
    w_ih = jax.random.uniform(keys[0], (4 * hid, in_size), jnp.float32, -k, k)
    w_hh = jax.random.uniform(keys[1], (4 * hid, hid), jnp.float32, -k, k)
    b_ih = jax.random.uniform(keys[2], (4 * hid,), jnp.float32, -k, k)
    b_hh = jax.random.uniform(keys[3], (4 * hid,), jnp.float32, -k, k)
    w_lin = jax.random.uniform(keys[4], (out_size, hid), jnp.float32, -k, k)
    b_lin = jax.random.uniform(keys[5], (out_size,), jnp.float32, -k, k)
    return (w_ih, w_hh, b_ih, b_hh, w_lin, b_lin)


def _ref_forward_single(x_tI, params, recur_bf16=False):
    """Pure-JAX reference, PyTorch gate order (i, f, g, o), zero initial state.
    recur_bf16=True mirrors the kernel's bf16 recurrence-matmul rounding."""
    w_ih, w_hh, b_ih, b_hh, w_lin, b_lin = params
    T, _ = x_tI.shape
    H = w_hh.shape[1]
    w_hh_mm = (w_hh.astype(jnp.bfloat16).astype(jnp.float32)
               if recur_bf16 else w_hh.astype(jnp.float32))
    h = jnp.zeros((1, H), jnp.float32)
    c = jnp.zeros((1, H), jnp.float32)
    for t in range(T):
        h_mm = h.astype(jnp.bfloat16).astype(jnp.float32) if recur_bf16 else h
        gates = x_tI[t:t + 1, :] @ w_ih.T + h_mm @ w_hh_mm.T + b_ih + b_hh
        i_g = jax.nn.sigmoid(gates[:, 0 * H:1 * H])
        f_g = jax.nn.sigmoid(gates[:, 1 * H:2 * H])
        g_g = jnp.tanh(gates[:, 2 * H:3 * H])
        o_g = jax.nn.sigmoid(gates[:, 3 * H:4 * H])
        c = f_g * c + i_g * g_g
        h = o_g * jnp.tanh(c)
    return (h @ w_lin.T + b_lin)[0]


if __name__ == "__main__":
    # Small shapes consistent with the module's forward:
    #   in_size=1, hidden=32, out_size=1, seq_len=12, 8 independent sequences
    #   (standing in for the fit()/evaluate() dataloader loop).
    in_size, hid, out_size, seq_len, num_seq = 1, 32, 1, 12, 8

    key = jax.random.PRNGKey(0)
    k_x, k_p = jax.random.split(key)
    seqs = jax.random.normal(k_x, (num_seq, seq_len, in_size), jnp.float32)
    params = init_params(k_p, in_size, hid, out_size)
    prepped = prepare_params(params)

    # Batched (grid) kernel over all sequences in one pallas_call.
    preds = lstm_linear_evaluate(seqs, prepped)
    jax.block_until_ready(preds)
    assert preds.shape == (num_seq, out_size)

    # Single-call Model.forward semantics (batch_first input, returns pred[-1]).
    single = lstm_linear_forward(seqs[:1], prepped)
    jax.block_until_ready(single)
    assert single.shape == (out_size,)
    assert jnp.allclose(single, preds[0], atol=1e-6)

    # Tight check vs a reference that matches the kernel's bf16 recurrence.
    ref_bf16 = jnp.stack(
        [_ref_forward_single(seqs[s], params, recur_bf16=True)
         for s in range(num_seq)])
    assert jnp.allclose(preds, ref_bf16, rtol=2e-4, atol=2e-4), (preds, ref_bf16)

    # Loose check vs the exact fp32 PyTorch-semantics reference.
    ref_f32 = jnp.stack(
        [_ref_forward_single(seqs[s], params, recur_bf16=False)
         for s in range(num_seq)])
    assert jnp.allclose(preds, ref_f32, rtol=5e-2, atol=5e-2), (preds, ref_f32)

    print("KERNEL_OK")
</pallas_src>

<mosaic_0001>
module attributes {stable_mosaic.version = 11 : i64} {
  func.func @lstm_linear_kernel(%arg0: i32, %arg1: memref<1x12x1xf32, #tpu.memory_space<vmem>>, %arg2: memref<1x128xf32, #tpu.memory_space<vmem>>, %arg3: memref<32x128xbf16, #tpu.memory_space<vmem>>, %arg4: memref<1x128xf32, #tpu.memory_space<vmem>>, %arg5: memref<1x32xf32, #tpu.memory_space<vmem>>, %arg6: memref<1x1xf32, #tpu.memory_space<vmem>>, %arg7: memref<1x1x1xf32, #tpu.memory_space<vmem>>) attributes {dimension_semantics = [#tpu.dimension_semantics<parallel>], iteration_bounds = array<i64: 8>, scalar_prefetch = 0 : i64, scratch_operands = 0 : i64, tpu.core_type = #tpu.core_type<tc>, window_params = [{transform_indices = @transform_0, window_bounds = array<i64: 1, 12, 1>}, {pipeline_mode = #tpu.pipeline_mode<synchronous>, transform_indices = @transform_1, window_bounds = array<i64: 1, 128>}, {pipeline_mode = #tpu.pipeline_mode<synchronous>, transform_indices = @transform_2, window_bounds = array<i64: 32, 128>}, {pipeline_mode = #tpu.pipeline_mode<synchronous>, transform_indices = @transform_3, window_bounds = array<i64: 1, 128>}, {pipeline_mode = #tpu.pipeline_mode<synchronous>, transform_indices = @transform_4, window_bounds = array<i64: 1, 32>}, {pipeline_mode = #tpu.pipeline_mode<synchronous>, transform_indices = @transform_5, window_bounds = array<i64: 1, 1>}, {transform_indices = @transform_6, window_bounds = array<i64: 1, 1, 1>}]} {
    %c0 = arith.constant 0 : index
    %c0_0 = arith.constant 0 : index
    %c0_1 = arith.constant 0 : index
    %0 = vector.load %arg1[%c0, %c0_0, %c0_1] : memref<1x12x1xf32, #tpu.memory_space<vmem>>, vector<1x12x1xf32>
    %1 = vector.shape_cast %0 : vector<1x12x1xf32> to vector<12x1xf32>
    %c0_2 = arith.constant 0 : index
    %c0_3 = arith.constant 0 : index
    %2 = vector.load %arg2[%c0_2, %c0_3] : memref<1x128xf32, #tpu.memory_space<vmem>>, vector<1x128xf32>
    %c0_4 = arith.constant 0 : index
    %c0_5 = arith.constant 0 : index
    %3 = vector.load %arg3[%c0_4, %c0_5] : memref<32x128xbf16, #tpu.memory_space<vmem>>, vector<32x128xbf16>
    %c0_6 = arith.constant 0 : index
    %c0_7 = arith.constant 0 : index
    %4 = vector.load %arg4[%c0_6, %c0_7] : memref<1x128xf32, #tpu.memory_space<vmem>>, vector<1x128xf32>
    %5 = vector.broadcast %1 : vector<12x1xf32> to vector<12x128xf32>
    %6 = vector.broadcast %2 : vector<1x128xf32> to vector<12x128xf32>
    %7 = arith.mulf %5, %6 : vector<12x128xf32>
    %8 = vector.broadcast %4 : vector<1x128xf32> to vector<12x128xf32>
    %9 = arith.addf %7, %8 : vector<12x128xf32>
    %cst = arith.constant 0.000000e+00 : f32
    %10 = vector.broadcast %cst : f32 to vector<1x32xf32>
    %cst_8 = arith.constant 0.000000e+00 : f32
    %11 = vector.broadcast %cst_8 : f32 to vector<1x32xf32>
    %12 = arith.truncf %10 : vector<1x32xf32> to vector<1x32xbf16>
    %cst_9 = arith.constant dense<0.000000e+00> : vector<1x128xf32>
    %13 = tpu.matmul %12, %3, %cst_9 {dimension_numbers = #tpu.dot_dimension_numbers<[1], [0], [0], [1], [0, 0, 1, 1], [], []>} : vector<1x32xbf16>, vector<32x128xbf16>, vector<1x128xf32> -> vector<1x128xf32>
    %14 = vector.extract_strided_slice %9 {offsets = [0, 0], sizes = [1, 128], strides = [1, 1]} : vector<12x128xf32> to vector<1x128xf32>
    %15 = arith.addf %13, %14 : vector<1x128xf32>
    %16 = vector.extract_strided_slice %15 {offsets = [0, 0], sizes = [1, 96], strides = [1, 1]} : vector<1x128xf32> to vector<1x96xf32>
    %17 = arith.negf %16 : vector<1x96xf32>
    %18 = math.exp %17 : vector<1x96xf32>
    %cst_10 = arith.constant 1.000000e+00 : f32
    %19 = vector.broadcast %cst_10 : f32 to vector<1x96xf32>
    %20 = arith.addf %19, %18 : vector<1x96xf32>
    %21 = arith.divf %19, %20 : vector<1x96xf32>
    %22 = vector.extract_strided_slice %21 {offsets = [0, 0], sizes = [1, 32], strides = [1, 1]} : vector<1x96xf32> to vector<1x32xf32>
    %23 = vector.extract_strided_slice %21 {offsets = [0, 32], sizes = [1, 32], strides = [1, 1]} : vector<1x96xf32> to vector<1x32xf32>
    %24 = vector.extract_strided_slice %21 {offsets = [0, 64], sizes = [1, 32], strides = [1, 1]} : vector<1x96xf32> to vector<1x32xf32>
    %25 = vector.extract_strided_slice %15 {offsets = [0, 96], sizes = [1, 32], strides = [1, 1]} : vector<1x128xf32> to vector<1x32xf32>
    %26 = math.tanh %25 : vector<1x32xf32>
    %27 = arith.mulf %23, %11 : vector<1x32xf32>
    %28 = arith.mulf %22, %26 : vector<1x32xf32>
    %29 = arith.addf %27, %28 : vector<1x32xf32>
    %30 = math.tanh %29 : vector<1x32xf32>
    %31 = arith.mulf %24, %30 : vector<1x32xf32>
    %32 = arith.truncf %31 : vector<1x32xf32> to vector<1x32xbf16>
    %cst_11 = arith.constant dense<0.000000e+00> : vector<1x128xf32>
    %33 = tpu.matmul %32, %3, %cst_11 {dimension_numbers = #tpu.dot_dimension_numbers<[1], [0], [0], [1], [0, 0, 1, 1], [], []>} : vector<1x32xbf16>, vector<32x128xbf16>, vector<1x128xf32> -> vector<1x128xf32>
    %34 = vector.extract_strided_slice %9 {offsets = [1, 0], sizes = [1, 128], strides = [1, 1]} : vector<12x128xf32> to vector<1x128xf32>
    %35 = arith.addf %33, %34 : vector<1x128xf32>
    %36 = vector.extract_strided_slice %35 {offsets = [0, 0], sizes = [1, 96], strides = [1, 1]} : vector<1x128xf32> to vector<1x96xf32>
    %37 = arith.negf %36 : vector<1x96xf32>
    %38 = math.exp %37 : vector<1x96xf32>
    %cst_12 = arith.constant 1.000000e+00 : f32
    %39 = vector.broadcast %cst_12 : f32 to vector<1x96xf32>
    %40 = arith.addf %39, %38 : vector<1x96xf32>
    %41 = arith.divf %39, %40 : vector<1x96xf32>
    %42 = vector.extract_strided_slice %41 {offsets = [0, 0], sizes = [1, 32], strides = [1, 1]} : vector<1x96xf32> to vector<1x32xf32>
    %43 = vector.extract_strided_slice %41 {offsets = [0, 32], sizes = [1, 32], strides = [1, 1]} : vector<1x96xf32> to vector<1x32xf32>
    %44 = vector.extract_strided_slice %41 {offsets = [0, 64], sizes = [1, 32], strides = [1, 1]} : vector<1x96xf32> to vector<1x32xf32>
    %45 = vector.extract_strided_slice %35 {offsets = [0, 96], sizes = [1, 32], strides = [1, 1]} : vector<1x128xf32> to vector<1x32xf32>
    %46 = math.tanh %45 : vector<1x32xf32>
    %47 = arith.mulf %43, %29 : vector<1x32xf32>
    %48 = arith.mulf %42, %46 : vector<1x32xf32>
    %49 = arith.addf %47, %48 : vector<1x32xf32>
    %50 = math.tanh %49 : vector<1x32xf32>
    %51 = arith.mulf %44, %50 : vector<1x32xf32>
    %52 = arith.truncf %51 : vector<1x32xf32> to vector<1x32xbf16>
    %cst_13 = arith.constant dense<0.000000e+00> : vector<1x128xf32>
    %53 = tpu.matmul %52, %3, %cst_13 {dimension_numbers = #tpu.dot_dimension_numbers<[1], [0], [0], [1], [0, 0, 1, 1], [], []>} : vector<1x32xbf16>, vector<32x128xbf16>, vector<1x128xf32> -> vector<1x128xf32>
    %54 = vector.extract_strided_slice %9 {offsets = [2, 0], sizes = [1, 128], strides = [1, 1]} : vector<12x128xf32> to vector<1x128xf32>
    %55 = arith.addf %53, %54 : vector<1x128xf32>
    %56 = vector.extract_strided_slice %55 {offsets = [0, 0], sizes = [1, 96], strides = [1, 1]} : vector<1x128xf32> to vector<1x96xf32>
    %57 = arith.negf %56 : vector<1x96xf32>
    %58 = math.exp %57 : vector<1x96xf32>
    %cst_14 = arith.constant 1.000000e+00 : f32
    %59 = vector.broadcast %cst_14 : f32 to vector<1x96xf32>
    %60 = arith.addf %59, %58 : vector<1x96xf32>
    %61 = arith.divf %59, %60 : vector<1x96xf32>
    %62 = vector.extract_strided_slice %61 {offsets = [0, 0], sizes = [1, 32], strides = [1, 1]} : vector<1x96xf32> to vector<1x32xf32>
    %63 = vector.extract_strided_slice %61 {offsets = [0, 32], sizes = [1, 32], strides = [1, 1]} : vector<1x96xf32> to vector<1x32xf32>
    %64 = vector.extract_strided_slice %61 {offsets = [0, 64], sizes = [1, 32], strides = [1, 1]} : vector<1x96xf32> to vector<1x32xf32>
    %65 = vector.extract_strided_slice %55 {offsets = [0, 96], sizes = [1, 32], strides = [1, 1]} : vector<1x128xf32> to vector<1x32xf32>
    %66 = math.tanh %65 : vector<1x32xf32>
    %67 = arith.mulf %63, %49 : vector<1x32xf32>
    %68 = arith.mulf %62, %66 : vector<1x32xf32>
    %69 = arith.addf %67, %68 : vector<1x32xf32>
    %70 = math.tanh %69 : vector<1x32xf32>
    %71 = arith.mulf %64, %70 : vector<1x32xf32>
    %72 = arith.truncf %71 : vector<1x32xf32> to vector<1x32xbf16>
    %cst_15 = arith.constant dense<0.000000e+00> : vector<1x128xf32>
    %73 = tpu.matmul %72, %3, %cst_15 {dimension_numbers = #tpu.dot_dimension_numbers<[1], [0], [0], [1], [0, 0, 1, 1], [], []>} : vector<1x32xbf16>, vector<32x128xbf16>, vector<1x128xf32> -> vector<1x128xf32>
    %74 = vector.extract_strided_slice %9 {offsets = [3, 0], sizes = [1, 128], strides = [1, 1]} : vector<12x128xf32> to vector<1x128xf32>
    %75 = arith.addf %73, %74 : vector<1x128xf32>
    %76 = vector.extract_strided_slice %75 {offsets = [0, 0], sizes = [1, 96], strides = [1, 1]} : vector<1x128xf32> to vector<1x96xf32>
    %77 = arith.negf %76 : vector<1x96xf32>
    %78 = math.exp %77 : vector<1x96xf32>
    %cst_16 = arith.constant 1.000000e+00 : f32
    %79 = vector.broadcast %cst_16 : f32 to vector<1x96xf32>
    %80 = arith.addf %79, %78 : vector<1x96xf32>
    %81 = arith.divf %79, %80 : vector<1x96xf32>
    %82 = vector.extract_strided_slice %81 {offsets = [0, 0], sizes = [1, 32], strides = [1, 1]} : vector<1x96xf32> to vector<1x32xf32>
    %83 = vector.extract_strided_slice %81 {offsets = [0, 32], sizes = [1, 32], strides = [1, 1]} : vector<1x96xf32> to vector<1x32xf32>
    %84 = vector.extract_strided_slice %81 {offsets = [0, 64], sizes = [1, 32], strides = [1, 1]} : vector<1x96xf32> to vector<1x32xf32>
    %85 = vector.extract_strided_slice %75 {offsets = [0, 96], sizes = [1, 32], strides = [1, 1]} : vector<1x128xf32> to vector<1x32xf32>
    %86 = math.tanh %85 : vector<1x32xf32>
    %87 = arith.mulf %83, %69 : vector<1x32xf32>
    %88 = arith.mulf %82, %86 : vector<1x32xf32>
    %89 = arith.addf %87, %88 : vector<1x32xf32>
    %90 = math.tanh %89 : vector<1x32xf32>
    %91 = arith.mulf %84, %90 : vector<1x32xf32>
    %92 = arith.truncf %91 : vector<1x32xf32> to vector<1x32xbf16>
    %cst_17 = arith.constant dense<0.000000e+00> : vector<1x128xf32>
    %93 = tpu.matmul %92, %3, %cst_17 {dimension_numbers = #tpu.dot_dimension_numbers<[1], [0], [0], [1], [0, 0, 1, 1], [], []>} : vector<1x32xbf16>, vector<32x128xbf16>, vector<1x128xf32> -> vector<1x128xf32>
    %94 = vector.extract_strided_slice %9 {offsets = [4, 0], sizes = [1, 128], strides = [1, 1]} : vector<12x128xf32> to vector<1x128xf32>
    %95 = arith.addf %93, %94 : vector<1x128xf32>
    %96 = vector.extract_strided_slice %95 {offsets = [0, 0], sizes = [1, 96], strides = [1, 1]} : vector<1x128xf32> to vector<1x96xf32>
    %97 = arith.negf %96 : vector<1x96xf32>
    %98 = math.exp %97 : vector<1x96xf32>
    %cst_18 = arith.constant 1.000000e+00 : f32
    %99 = vector.broadcast %cst_18 : f32 to vector<1x96xf32>
    %100 = arith.addf %99, %98 : vector<1x96xf32>
    %101 = arith.divf %99, %100 : vector<1x96xf32>
    %102 = vector.extract_strided_slice %101 {offsets = [0, 0], sizes = [1, 32], strides = [1, 1]} : vector<1x96xf32> to vector<1x32xf32>
    %103 = vector.extract_strided_slice %101 {offsets = [0, 32], sizes = [1, 32], strides = [1, 1]} : vector<1x96xf32> to vector<1x32xf32>
    %104 = vector.extract_strided_slice %101 {offsets = [0, 64], sizes = [1, 32], strides = [1, 1]} : vector<1x96xf32> to vector<1x32xf32>
    %105 = vector.extract_strided_slice %95 {offsets = [0, 96], sizes = [1, 32], strides = [1, 1]} : vector<1x128xf32> to vector<1x32xf32>
    %106 = math.tanh %105 : vector<1x32xf32>
    %107 = arith.mulf %103, %89 : vector<1x32xf32>
    %108 = arith.mulf %102, %106 : vector<1x32xf32>
    %109 = arith.addf %107, %108 : vector<1x32xf32>
    %110 = math.tanh %109 : vector<1x32xf32>
    %111 = arith.mulf %104, %110 : vector<1x32xf32>
    %112 = arith.truncf %111 : vector<1x32xf32> to vector<1x32xbf16>
    %cst_19 = arith.constant dense<0.000000e+00> : vector<1x128xf32>
    %113 = tpu.matmul %112, %3, %cst_19 {dimension_numbers = #tpu.dot_dimension_numbers<[1], [0], [0], [1], [0, 0, 1, 1], [], []>} : vector<1x32xbf16>, vector<32x128xbf16>, vector<1x128xf32> -> vector<1x128xf32>
    %114 = vector.extract_strided_slice %9 {offsets = [5, 0], sizes = [1, 128], strides = [1, 1]} : vector<12x128xf32> to vector<1x128xf32>
    %115 = arith.addf %113, %114 : vector<1x128xf32>
    %116 = vector.extract_strided_slice %115 {offsets = [0, 0], sizes = [1, 96], strides = [1, 1]} : vector<1x128xf32> to vector<1x96xf32>
    %117 = arith.negf %116 : vector<1x96xf32>
    %118 = math.exp %117 : vector<1x96xf32>
    %cst_20 = arith.constant 1.000000e+00 : f32
    %119 = vector.broadcast %cst_20 : f32 to vector<1x96xf32>
    %120 = arith.addf %119, %118 : vector<1x96xf32>
    %121 = arith.divf %119, %120 : vector<1x96xf32>
    %122 = vector.extract_strided_slice %121 {offsets = [0, 0], sizes = [1, 32], strides = [1, 1]} : vector<1x96xf32> to vector<1x32xf32>
    %123 = vector.extract_strided_slice %121 {offsets = [0, 32], sizes = [1, 32], strides = [1, 1]} : vector<1x96xf32> to vector<1x32xf32>
    %124 = vector.extract_strided_slice %121 {offsets = [0, 64], sizes = [1, 32], strides = [1, 1]} : vector<1x96xf32> to vector<1x32xf32>
    %125 = vector.extract_strided_slice %115 {offsets = [0, 96], sizes = [1, 32], strides = [1, 1]} : vector<1x128xf32> to vector<1x32xf32>
    %126 = math.tanh %125 : vector<1x32xf32>
    %127 = arith.mulf %123, %109 : vector<1x32xf32>
    %128 = arith.mulf %122, %126 : vector<1x32xf32>
    %129 = arith.addf %127, %128 : vector<1x32xf32>
    %130 = math.tanh %129 : vector<1x32xf32>
    %131 = arith.mulf %124, %130 : vector<1x32xf32>
    %132 = arith.truncf %131 : vector<1x32xf32> to vector<1x32xbf16>
    %cst_21 = arith.constant dense<0.000000e+00> : vector<1x128xf32>
    %133 = tpu.matmul %132, %3, %cst_21 {dimension_numbers = #tpu.dot_dimension_numbers<[1], [0], [0], [1], [0, 0, 1, 1], [], []>} : vector<1x32xbf16>, vector<32x128xbf16>, vector<1x128xf32> -> vector<1x128xf32>
    %134 = vector.extract_strided_slice %9 {offsets = [6, 0], sizes = [1, 128], strides = [1, 1]} : vector<12x128xf32> to vector<1x128xf32>
    %135 = arith.addf %133, %134 : vector<1x128xf32>
    %136 = vector.extract_strided_slice %135 {offsets = [0, 0], sizes = [1, 96], strides = [1, 1]} : vector<1x128xf32> to vector<1x96xf32>
    %137 = arith.negf %136 : vector<1x96xf32>
    %138 = math.exp %137 : vector<1x96xf32>
    %cst_22 = arith.constant 1.000000e+00 : f32
    %139 = vector.broadcast %cst_22 : f32 to vector<1x96xf32>
    %140 = arith.addf %139, %138 : vector<1x96xf32>
    %141 = arith.divf %139, %140 : vector<1x96xf32>
    %142 = vector.extract_strided_slice %141 {offsets = [0, 0], sizes = [1, 32], strides = [1, 1]} : vector<1x96xf32> to vector<1x32xf32>
    %143 = vector.extract_strided_slice %141 {offsets = [0, 32], sizes = [1, 32], strides = [1, 1]} : vector<1x96xf32> to vector<1x32xf32>
    %144 = vector.extract_strided_slice %141 {offsets = [0, 64], sizes = [1, 32], strides = [1, 1]} : vector<1x96xf32> to vector<1x32xf32>
    %145 = vector.extract_strided_slice %135 {offsets = [0, 96], sizes = [1, 32], strides = [1, 1]} : vector<1x128xf32> to vector<1x32xf32>
    %146 = math.tanh %145 : vector<1x32xf32>
    %147 = arith.mulf %143, %129 : vector<1x32xf32>
    %148 = arith.mulf %142, %146 : vector<1x32xf32>
    %149 = arith.addf %147, %148 : vector<1x32xf32>
    %150 = math.tanh %149 : vector<1x32xf32>
    %151 = arith.mulf %144, %150 : vector<1x32xf32>
    %152 = arith.truncf %151 : vector<1x32xf32> to vector<1x32xbf16>
    %cst_23 = arith.constant dense<0.000000e+00> : vector<1x128xf32>
    %153 = tpu.matmul %152, %3, %cst_23 {dimension_numbers = #tpu.dot_dimension_numbers<[1], [0], [0], [1], [0, 0, 1, 1], [], []>} : vector<1x32xbf16>, vector<32x128xbf16>, vector<1x128xf32> -> vector<1x128xf32>
    %154 = vector.extract_strided_slice %9 {offsets = [7, 0], sizes = [1, 128], strides = [1, 1]} : vector<12x128xf32> to vector<1x128xf32>
    %155 = arith.addf %153, %154 : vector<1x128xf32>
    %156 = vector.extract_strided_slice %155 {offsets = [0, 0], sizes = [1, 96], strides = [1, 1]} : vector<1x128xf32> to vector<1x96xf32>
    %157 = arith.negf %156 : vector<1x96xf32>
    %158 = math.exp %157 : vector<1x96xf32>
    %cst_24 = arith.constant 1.000000e+00 : f32
    %159 = vector.broadcast %cst_24 : f32 to vector<1x96xf32>
    %160 = arith.addf %159, %158 : vector<1x96xf32>
    %161 = arith.divf %159, %160 : vector<1x96xf32>
    %162 = vector.extract_strided_slice %161 {offsets = [0, 0], sizes = [1, 32], strides = [1, 1]} : vector<1x96xf32> to vector<1x32xf32>
    %163 = vector.extract_strided_slice %161 {offsets = [0, 32], sizes = [1, 32], strides = [1, 1]} : vector<1x96xf32> to vector<1x32xf32>
    %164 = vector.extract_strided_slice %161 {offsets = [0, 64], sizes = [1, 32], strides = [1, 1]} : vector<1x96xf32> to vector<1x32xf32>
    %165 = vector.extract_strided_slice %155 {offsets = [0, 96], sizes = [1, 32], strides = [1, 1]} : vector<1x128xf32> to vector<1x32xf32>
    %166 = math.tanh %165 : vector<1x32xf32>
    %167 = arith.mulf %163, %149 : vector<1x32xf32>
    %168 = arith.mulf %162, %166 : vector<1x32xf32>
    %169 = arith.addf %167, %168 : vector<1x32xf32>
    %170 = math.tanh %169 : vector<1x32xf32>
    %171 = arith.mulf %164, %170 : vector<1x32xf32>
    %172 = arith.truncf %171 : vector<1x32xf32> to vector<1x32xbf16>
    %cst_25 = arith.constant dense<0.000000e+00> : vector<1x128xf32>
    %173 = tpu.matmul %172, %3, %cst_25 {dimension_numbers = #tpu.dot_dimension_numbers<[1], [0], [0], [1], [0, 0, 1, 1], [], []>} : vector<1x32xbf16>, vector<32x128xbf16>, vector<1x128xf32> -> vector<1x128xf32>
    %174 = vector.extract_strided_slice %9 {offsets = [8, 0], sizes = [1, 128], strides = [1, 1]} : vector<12x128xf32> to vector<1x128xf32>
    %175 = arith.addf %173, %174 : vector<1x128xf32>
    %176 = vector.extract_strided_slice %175 {offsets = [0, 0], sizes = [1, 96], strides = [1, 1]} : vector<1x128xf32> to vector<1x96xf32>
    %177 = arith.negf %176 : vector<1x96xf32>
    %178 = math.exp %177 : vector<1x96xf32>
    %cst_26 = arith.constant 1.000000e+00 : f32
    %179 = vector.broadcast %cst_26 : f32 to vector<1x96xf32>
    %180 = arith.addf %179, %178 : vector<1x96xf32>
    %181 = arith.divf %179, %180 : vector<1x96xf32>
    %182 = vector.extract_strided_slice %181 {offsets = [0, 0], sizes = [1, 32], strides = [1, 1]} : vector<1x96xf32> to vector<1x32xf32>
    %183 = vector.extract_strided_slice %181 {offsets = [0, 32], sizes = [1, 32], strides = [1, 1]} : vector<1x96xf32> to vector<1x32xf32>
    %184 = vector.extract_strided_slice %181 {offsets = [0, 64], sizes = [1, 32], strides = [1, 1]} : vector<1x96xf32> to vector<1x32xf32>
    %185 = vector.extract_strided_slice %175 {offsets = [0, 96], sizes = [1, 32], strides = [1, 1]} : vector<1x128xf32> to vector<1x32xf32>
    %186 = math.tanh %185 : vector<1x32xf32>
    %187 = arith.mulf %183, %169 : vector<1x32xf32>
    %188 = arith.mulf %182, %186 : vector<1x32xf32>
    %189 = arith.addf %187, %188 : vector<1x32xf32>
    %190 = math.tanh %189 : vector<1x32xf32>
    %191 = arith.mulf %184, %190 : vector<1x32xf32>
    %192 = arith.truncf %191 : vector<1x32xf32> to vector<1x32xbf16>
    %cst_27 = arith.constant dense<0.000000e+00> : vector<1x128xf32>
    %193 = tpu.matmul %192, %3, %cst_27 {dimension_numbers = #tpu.dot_dimension_numbers<[1], [0], [0], [1], [0, 0, 1, 1], [], []>} : vector<1x32xbf16>, vector<32x128xbf16>, vector<1x128xf32> -> vector<1x128xf32>
    %194 = vector.extract_strided_slice %9 {offsets = [9, 0], sizes = [1, 128], strides = [1, 1]} : vector<12x128xf32> to vector<1x128xf32>
    %195 = arith.addf %193, %194 : vector<1x128xf32>
    %196 = vector.extract_strided_slice %195 {offsets = [0, 0], sizes = [1, 96], strides = [1, 1]} : vector<1x128xf32> to vector<1x96xf32>
    %197 = arith.negf %196 : vector<1x96xf32>
    %198 = math.exp %197 : vector<1x96xf32>
    %cst_28 = arith.constant 1.000000e+00 : f32
    %199 = vector.broadcast %cst_28 : f32 to vector<1x96xf32>
    %200 = arith.addf %199, %198 : vector<1x96xf32>
    %201 = arith.divf %199, %200 : vector<1x96xf32>
    %202 = vector.extract_strided_slice %201 {offsets = [0, 0], sizes = [1, 32], strides = [1, 1]} : vector<1x96xf32> to vector<1x32xf32>
    %203 = vector.extract_strided_slice %201 {offsets = [0, 32], sizes = [1, 32], strides = [1, 1]} : vector<1x96xf32> to vector<1x32xf32>
    %204 = vector.extract_strided_slice %201 {offsets = [0, 64], sizes = [1, 32], strides = [1, 1]} : vector<1x96xf32> to vector<1x32xf32>
    %205 = vector.extract_strided_slice %195 {offsets = [0, 96], sizes = [1, 32], strides = [1, 1]} : vector<1x128xf32> to vector<1x32xf32>
    %206 = math.tanh %205 : vector<1x32xf32>
    %207 = arith.mulf %203, %189 : vector<1x32xf32>
    %208 = arith.mulf %202, %206 : vector<1x32xf32>
    %209 = arith.addf %207, %208 : vector<1x32xf32>
    %210 = math.tanh %209 : vector<1x32xf32>
    %211 = arith.mulf %204, %210 : vector<1x32xf32>
    %212 = arith.truncf %211 : vector<1x32xf32> to vector<1x32xbf16>
    %cst_29 = arith.constant dense<0.000000e+00> : vector<1x128xf32>
    %213 = tpu.matmul %212, %3, %cst_29 {dimension_numbers = #tpu.dot_dimension_numbers<[1], [0], [0], [1], [0, 0, 1, 1], [], []>} : vector<1x32xbf16>, vector<32x128xbf16>, vector<1x128xf32> -> vector<1x128xf32>
    %214 = vector.extract_strided_slice %9 {offsets = [10, 0], sizes = [1, 128], strides = [1, 1]} : vector<12x128xf32> to vector<1x128xf32>
    %215 = arith.addf %213, %214 : vector<1x128xf32>
    %216 = vector.extract_strided_slice %215 {offsets = [0, 0], sizes = [1, 96], strides = [1, 1]} : vector<1x128xf32> to vector<1x96xf32>
    %217 = arith.negf %216 : vector<1x96xf32>
    %218 = math.exp %217 : vector<1x96xf32>
    %cst_30 = arith.constant 1.000000e+00 : f32
    %219 = vector.broadcast %cst_30 : f32 to vector<1x96xf32>
    %220 = arith.addf %219, %218 : vector<1x96xf32>
    %221 = arith.divf %219, %220 : vector<1x96xf32>
    %222 = vector.extract_strided_slice %221 {offsets = [0, 0], sizes = [1, 32], strides = [1, 1]} : vector<1x96xf32> to vector<1x32xf32>
    %223 = vector.extract_strided_slice %221 {offsets = [0, 32], sizes = [1, 32], strides = [1, 1]} : vector<1x96xf32> to vector<1x32xf32>
    %224 = vector.extract_strided_slice %221 {offsets = [0, 64], sizes = [1, 32], strides = [1, 1]} : vector<1x96xf32> to vector<1x32xf32>
    %225 = vector.extract_strided_slice %215 {offsets = [0, 96], sizes = [1, 32], strides = [1, 1]} : vector<1x128xf32> to vector<1x32xf32>
    %226 = math.tanh %225 : vector<1x32xf32>
    %227 = arith.mulf %223, %209 : vector<1x32xf32>
    %228 = arith.mulf %222, %226 : vector<1x32xf32>
    %229 = arith.addf %227, %228 : vector<1x32xf32>
    %230 = math.tanh %229 : vector<1x32xf32>
    %231 = arith.mulf %224, %230 : vector<1x32xf32>
    %232 = arith.truncf %231 : vector<1x32xf32> to vector<1x32xbf16>
    %cst_31 = arith.constant dense<0.000000e+00> : vector<1x128xf32>
    %233 = tpu.matmul %232, %3, %cst_31 {dimension_numbers = #tpu.dot_dimension_numbers<[1], [0], [0], [1], [0, 0, 1, 1], [], []>} : vector<1x32xbf16>, vector<32x128xbf16>, vector<1x128xf32> -> vector<1x128xf32>
    %234 = vector.extract_strided_slice %9 {offsets = [11, 0], sizes = [1, 128], strides = [1, 1]} : vector<12x128xf32> to vector<1x128xf32>
    %235 = arith.addf %233, %234 : vector<1x128xf32>
    %236 = vector.extract_strided_slice %235 {offsets = [0, 0], sizes = [1, 96], strides = [1, 1]} : vector<1x128xf32> to vector<1x96xf32>
    %237 = arith.negf %236 : vector<1x96xf32>
    %238 = math.exp %237 : vector<1x96xf32>
    %cst_32 = arith.constant 1.000000e+00 : f32
    %239 = vector.broadcast %cst_32 : f32 to vector<1x96xf32>
    %240 = arith.addf %239, %238 : vector<1x96xf32>
    %241 = arith.divf %239, %240 : vector<1x96xf32>
    %242 = vector.extract_strided_slice %241 {offsets = [0, 0], sizes = [1, 32], strides = [1, 1]} : vector<1x96xf32> to vector<1x32xf32>
    %243 = vector.extract_strided_slice %241 {offsets = [0, 32], sizes = [1, 32], strides = [1, 1]} : vector<1x96xf32> to vector<1x32xf32>
    %244 = vector.extract_strided_slice %241 {offsets = [0, 64], sizes = [1, 32], strides = [1, 1]} : vector<1x96xf32> to vector<1x32xf32>
    %245 = vector.extract_strided_slice %235 {offsets = [0, 96], sizes = [1, 32], strides = [1, 1]} : vector<1x128xf32> to vector<1x32xf32>
    %246 = math.tanh %245 : vector<1x32xf32>
    %247 = arith.mulf %243, %229 : vector<1x32xf32>
    %248 = arith.mulf %242, %246 : vector<1x32xf32>
    %249 = arith.addf %247, %248 : vector<1x32xf32>
    %250 = math.tanh %249 : vector<1x32xf32>
    %251 = arith.mulf %244, %250 : vector<1x32xf32>
    %c0_33 = arith.constant 0 : index
    %c0_34 = arith.constant 0 : index
    %252 = vector.load %arg5[%c0_33, %c0_34] : memref<1x32xf32, #tpu.memory_space<vmem>>, vector<1x32xf32>
    %253 = arith.mulf %251, %252 : vector<1x32xf32>
    %cst_35 = arith.constant dense<0.000000e+00> : vector<1xf32>
    %254 = vector.multi_reduction <add>, %253, %cst_35 [1] : vector<1x32xf32> to vector<1xf32>
    %255 = vector.shape_cast %254 : vector<1xf32> to vector<1x1xf32>
    %c0_36 = arith.constant 0 : index
    %c0_37 = arith.constant 0 : index
    %256 = vector.load %arg6[%c0_36, %c0_37] : memref<1x1xf32, #tpu.memory_space<vmem>>, vector<1x1xf32>
    %257 = arith.addf %255, %256 : vector<1x1xf32>
    %c0_38 = arith.constant 0 : index
    %c0_39 = arith.constant 0 : index
    %c0_40 = arith.constant 0 : index
    %258 = vector.load %arg7[%c0_38, %c0_39, %c0_40] : memref<1x1x1xf32, #tpu.memory_space<vmem>>, vector<1x1x1xf32>
    %259 = vector.shape_cast %258 : vector<1x1x1xf32> to vector<1x1xf32>
    %260 = vector.shape_cast %257 : vector<1x1xf32> to vector<1x1x1xf32>
    tpu.vector_store %arg7[%c0_38, %c0_39, %c0_40], %260 {strides = array<i32>} : memref<1x1x1xf32, #tpu.memory_space<vmem>>, vector<1x1x1xf32>,
    return
  }
  func.func @transform_0(%arg0: i32) -> (i32, i32, i32) {
    %c0_i32 = arith.constant 0 : i32
    %c0_i32_0 = arith.constant 0 : i32
    %c0_i32_1 = arith.constant 0 : i32
    return %arg0, %c0_i32, %c0_i32_0 : i32, i32, i32
  }
  func.func @transform_1(%arg0: i32) -> (i32, i32) {
    %c0_i32 = arith.constant 0 : i32
    %c0_i32_0 = arith.constant 0 : i32
    %c0_i32_1 = arith.constant 0 : i32
    return %c0_i32, %c0_i32_0 : i32, i32
  }
  func.func @transform_2(%arg0: i32) -> (i32, i32) {
    %c0_i32 = arith.constant 0 : i32
    %c0_i32_0 = arith.constant 0 : i32
    %c0_i32_1 = arith.constant 0 : i32
    return %c0_i32, %c0_i32_0 : i32, i32
  }
  func.func @transform_3(%arg0: i32) -> (i32, i32) {
    %c0_i32 = arith.constant 0 : i32
    %c0_i32_0 = arith.constant 0 : i32
    %c0_i32_1 = arith.constant 0 : i32
    return %c0_i32, %c0_i32_0 : i32, i32
  }
  func.func @transform_4(%arg0: i32) -> (i32, i32) {
    %c0_i32 = arith.constant 0 : i32
    %c0_i32_0 = arith.constant 0 : i32
    %c0_i32_1 = arith.constant 0 : i32
    return %c0_i32, %c0_i32_0 : i32, i32
  }
  func.func @transform_5(%arg0: i32) -> (i32, i32) {
    %c0_i32 = arith.constant 0 : i32
    %c0_i32_0 = arith.constant 0 : i32
    %c0_i32_1 = arith.constant 0 : i32
    return %c0_i32, %c0_i32_0 : i32, i32
  }
  func.func @transform_6(%arg0: i32) -> (i32, i32, i32) {
    %c0_i32 = arith.constant 0 : i32
    %c0_i32_0 = arith.constant 0 : i32
    %c0_i32_1 = arith.constant 0 : i32
    return %arg0, %c0_i32, %c0_i32_0 : i32, i32, i32
  }
}

</mosaic_0001>

<bundles_post_ra>
// kernel: lstm_linear_evaluate.1
= control target key start
LH: loop header
LB: loop body
LE: loop exit
PB: predicated region body
PF: predicated region fallthrough
CT: control target
= control target key end

     0   :  { %s1571_s23 = smov 0   ;;  %s1771_s0 = inlined_call_operand.vmem [shape: f32[8,12,1], index: 0, kind: input, shape index: {}]   ;;  %s1772_s1 = inlined_call_operand.vmem [shape: f32[1,128], index: 1, kind: input, shape index: {}]   ;;  %s1773_s2 = inlined_call_operand.vmem [shape: bf16[32,128], index: 2, kind: input, shape index: {}]   ;;  %s1774_s3 = inlined_call_operand.vmem [shape: f32[1,128], index: 3, kind: input, shape index: {}]   ;;  %s1775_s4 = inlined_call_operand.vmem [shape: f32[1,32], index: 4, kind: input, shape index: {}]   ;;  %s1776_s5 = inlined_call_operand.<no memory space> [shape: f32[1,1], index: 5, kind: input, shape index: {}]   ;;  %s1777_s6 = inlined_call_operand.vmem [shape: f32[8,1,1], index: 6, kind: output, shape index: {}]  }
   0x1   :  { %v11_v0 = vstv %s1776_s5 }
   0x2   :  { %12 = vst [vmem:[#allocation2] sm:$0x1] %v11_v0 }
   0x3 LB: > { %s1237_s24 = sadd.s32 4294967295, %s1526_s23   ;;  %p1241_p0 = scmp.ge.s32.totalorder %s1526_s23, 1  ;;  %s1526_s23 = sphi %s1571_s23, %s18_s23  }
   0x4   : > { %p214_p1 = scmp.lt.s32.totalorder %s1526_s23, 9 }
   0x6   : > { %p215_p2 = pnand %p1241_p0, %p214_p1 }
   0x7   : > { %v1582_v1 = vld [vmem:[%s1773_s2] sm:$0xff] (!%p215_p2)   ;;  %v1528_v2 = vmov (!%p215_p2), 0.0   ;;  %v1590_v3 = vld [vmem:[%s1773_s2 + $0x8] sm:$0xff] (!%p215_p2)   ;;  %vm1529_vm0 = vmmov (!%p215_p2), 0   ;;  %p242_p3 = scmp.lt.s32.totalorder (!%p215_p2), %s1237_s24, 7  ;;  %v1530_v4 = vmov (!%p215_p2), 0  }
   0x8   : > { %218 = sbr.rel (%p215_p2) target bundleno = 8610 (0x21a2), region = 44  ;;  %1311 = vmatprep.subr.bf16.mxu0 (!%p215_p2), %v1528_v2  ;;  %1319 = vmatprep.subr.bf16.mxu1 (!%p215_p2), %v1528_v2  ;;  %v1621_v6 = vld [vmem:[%s1772_s1] ss:$0 sm:$0xff] (!%p215_p2)  ;;  %s1531_s12 = smov (!%p215_p2), 32   ;;  %vm297_vm1 = vcmask (!%p215_p2), 261120   ;;  %vm1182_vm2 = vcmask (!%p215_p2), 253952  }
   0x9   : > { %1312 = vmatpush3.bf16.msra.mxu0 (!%p215_p2), %v1582_v1  ;;  %1315 = vmatprep.mubr.msk.bf16.mxu0 (!%p215_p2), %vm1529_vm0, %v1528_v2  ;;  %v1627_v9 = vld [vmem:[%s1774_s3] ss:$0 sm:$0xff] (!%p215_p2)  ;;  %s1532_s13 = smov (!%p215_p2), 64   ;;  %vm1188_vm3 = vcmask (!%p215_p2), 0  }
   0xa   : > { %1313 = vmatprep.subr.bf16.mxu0 (!%p215_p2), %v1528_v2  ;;  %1420 = vset.pattern.permute.xlu0 (!%p215_p2), %v1530_v4 }
   0xb   : > { %1320 = vmatpush3.bf16.msra.mxu1 (!%p215_p2), %v1582_v1  ;;  %1323 = vmatprep.mubr.msk.bf16.mxu1 (!%p215_p2), %vm1529_vm0, %v1528_v2 }
   0xc   : > { %1321 = vmatprep.subr.bf16.mxu1 (!%p215_p2), %v1528_v2  ;;  %1421 = vset.pattern.permute.xlu1 (!%p215_p2), %v1530_v4 }
   0xd   : > { %1314 = vmatpush3.bf16.msra.mxu0 (!%p215_p2), %v1590_v3 }
   0xe   : > { %1327 = vmatprep.subr.bf16.mxu0 (!%p215_p2), %v1528_v2 }
   0xf   : > { %s1779_s24 = smov (!%p242_p3, %s1237_s24), 7  ;;  %1322 = vmatpush3.bf16.msra.mxu1 %v1590_v3 }
  0x10   : > { %s1274_s28 = sshll.u32 %s1779_s24, 4  ;;  %1316 = vmatmul.mubr.bf16.vlgmr.msra.gmra.mrb[0].mxu0 %v1530_v4  ;;  %1335 = vmatprep.subr.bf16.mxu1 %v1528_v2  ;;  %s249_s18 = scalar_lea.vmem %s1777_s6, %s1779_s24 }
  0x11   : > { %s1606_s7 = scalar_lea.vmem %s1771_s0, %s1274_s28  ;;  %1328 = vmatpush3.bf16.msra.mxu0 %v1582_v1  ;;  %1331 = vmatprep.mubr.msk.bf16.mxu0 %vm1529_vm0, %v1528_v2 }
  0x12   : > { %v251_v5 = vld [vmem:[%s1606_s7] sm:$0xff]  ;;  %1329 = vmatprep.subr.bf16.mxu0 %v1528_v2 }
  0x13   : > { %261 = vperm.xlu0 %1420, %v251_v5  }
  0x15   : > { %1330 = vmatpush3.bf16.msra.mxu0 %v1590_v3 }
  0x16   : > { %1343 = vmatprep.subr.bf16.mxu0 %v1528_v2 }
  0x92   : > { %v262_v7 = vpop.permute.xlu0 %261 }
  0x93   : > { %v275_v8 = vmul.f32 %v1621_v6, %v262_v7 }
  0x95   : > { %v1630_v10 = vadd.f32 %v1627_v9, %v275_v8 }
  0x97   : > { %v370_v31 = vrot.slane %v1630_v10, 1  ;;  %v443_v52 = vrot.slane %v1630_v10, 2 }
  0xe3   : > { %v335_v11 = vpop.f32.mrb[0].mxu0 }
  0xe4   : > { %v336_v12 = vadd.f32 %v335_v11, %v1630_v10  ;;  %v1317_v13 = vpop.f32.mrb[1].mxu0 }
  0xe5   : > { %v338_v14 = vpop.f32.mrb[2].mxu0 }
  0xe6   : > { %1424 = vtanh.f32 %v336_v12  ;;  %v1318_v15 = vpop.f32.mrb[3].mxu0  ;;  %v1248_v17 = vmul.f32 -1.442695, %v336_v12 }
  0xe7   : > { %v516_v15 = vrot.slane %v1630_v10, 3 }
  0xe8   : > { %1426 = vpow2.f32 %v1248_v17 }
  0xf0   : > { %v1425_v16 = vpop.eup %1424 }
  0xf1   : > { %350 = vrot.lane.b32.xlu0 %v1425_v16, %s1531_s12 }
  0xf2   : > { %v1427_v18 = vpop.eup %1426 }
  0xf3   : > { %v344_v19 = vadd.f32 1.0, %v1427_v18 }
  0xf5   : > { %1428 = vrcp.f32 %v344_v19 }
  0xff   : > { %v1429_v20 = vpop.eup %1428 }
 0x100   : > { %v348_v23 = vmul.f32 0.0, %v1429_v20 }
 0x163   : > { %v351_v21 = vpop.permute.xlu0 %350 }
 0x164   : > { %v353_v22 = vmul.f32 %v1429_v20, %v351_v21 }
 0x166   : > { %355 = vrot.lane.b32.xlu1 %v353_v22, %s1531_s12 }
 0x1d8   : > { %v356_v24 = vpop.permute.xlu1 %355 }
 0x1d9   : > { %v358_v25 = vadd.f32 %v356_v24, %v348_v23 }
 0x1db   : > { %1430 = vtanh.f32 %v358_v25 }
 0x1e5   : > { %v1431_v26 = vpop.eup %1430 }
 0x1e6   : > { %361 = vrot.lane.b32.xlu1 %v1431_v26, %s1531_s12 }
 0x258   : > { %v362_v27 = vpop.permute.xlu1 %361 }
 0x259   : > { %v364_v28 = vmul.f32 %v1429_v20, %v362_v27 }
 0x25b   : > { %v365_v29 = vpack.c.bf16 %v364_v28, %v364_v28 }
 0x25d   : > { %367 = vrot.lane.b32.xlu0 %v365_v29, %s1532_s13 }
 0x2cf   : > { %v368_v30 = vpop.permute.xlu0 %367 }
 0x2d0   : > { %1324 = vmatmul.mubr.msk.bf16.vlgmr.msra.gmra.mrb[0].mxu1 %vm297_vm1, %v368_v30 }
 0x2d1   : > { %1336 = vmatpush3.bf16.msra.mxu1 %v1582_v1  ;;  %1339 = vmatprep.mubr.msk.bf16.mxu1 %vm1529_vm0, %v1528_v2 }
 0x2d2   : > { %1337 = vmatprep.subr.bf16.mxu1 %v1528_v2 }
 0x2d5   : > { %1338 = vmatpush3.bf16.msra.mxu1 %v1590_v3 }
 0x2d6   : > { %1351 = vmatprep.subr.bf16.mxu1 %v1528_v2 }
 0x3a3   : > { %v409_v32 = vpop.f32.mrb[0].mxu1 }
 0x3a4   : > { %v410_v33 = vadd.f32 %v409_v32, %v370_v31  ;;  %v1325_v34 = vpop.f32.mrb[1].mxu1 }
 0x3a5   : > { %v412_v35 = vpop.f32.mrb[2].mxu1 }
 0x3a6   : > { %1432 = vtanh.f32 %v410_v33  ;;  %v1326_v36 = vpop.f32.mrb[3].mxu1  ;;  %v1250_v38 = vmul.f32 -1.442695, %v410_v33 }
 0x3a7   : > { %v589_v36 = vrot.slane %v1630_v10, 4 }
 0x3a8   : > { %1434 = vpow2.f32 %v1250_v38 }
 0x3b0   : > { %v1433_v37 = vpop.eup %1432 }
 0x3b1   : > { %424 = vrot.lane.b32.xlu1 %v1433_v37, %s1531_s12 }
 0x3b2   : > { %v1435_v39 = vpop.eup %1434 }
 0x3b3   : > { %v418_v40 = vadd.f32 1.0, %v1435_v39 }
 0x3b5   : > { %1436 = vrcp.f32 %v418_v40 }
 0x3bf   : > { %v1437_v41 = vpop.eup %1436 }
 0x3c0   : > { %v422_v44 = vmul.f32 %v1437_v41, %v358_v25 }
 0x423   : > { %v425_v42 = vpop.permute.xlu1 %424 }
 0x424   : > { %v427_v43 = vmul.f32 %v1437_v41, %v425_v42 }
 0x426   : > { %429 = vrot.lane.b32.xlu0 %v427_v43, %s1531_s12 }
 0x498   : > { %v430_v45 = vpop.permute.xlu0 %429 }
 0x499   : > { %v432_v46 = vadd.f32 %v430_v45, %v422_v44 }
 0x49b   : > { %1438 = vtanh.f32 %v432_v46 }
 0x4a5   : > { %v1439_v47 = vpop.eup %1438 }
 0x4a6   : > { %435 = vrot.lane.b32.xlu1 %v1439_v47, %s1531_s12 }
 0x518   : > { %v436_v48 = vpop.permute.xlu1 %435 }
 0x519   : > { %v438_v49 = vmul.f32 %v1437_v41, %v436_v48 }
 0x51b   : > { %v439_v50 = vpack.c.bf16 %v438_v49, %v438_v49 }
 0x51d   : > { %441 = vrot.lane.b32.xlu0 %v439_v50, %s1532_s13 }
 0x58f   : > { %v442_v51 = vpop.permute.xlu0 %441 }
 0x590   : > { %1332 = vmatmul.mubr.msk.bf16.vlgmr.msra.gmra.mrb[4].mxu0 %vm297_vm1, %v442_v51 }
 0x591   : > { %1344 = vmatpush3.bf16.msra.mxu0 %v1582_v1  ;;  %1347 = vmatprep.mubr.msk.bf16.mxu0 %vm1529_vm0, %v1528_v2 }
 0x592   : > { %1345 = vmatprep.subr.bf16.mxu0 %v1528_v2 }
 0x595   : > { %1346 = vmatpush3.bf16.msra.mxu0 %v1590_v3 }
 0x596   : > { %1359 = vmatprep.subr.bf16.mxu0 %v1528_v2 }
 0x663   : > { %v482_v53 = vpop.f32.mrb[4].mxu0 }
 0x664   : > { %v483_v54 = vadd.f32 %v482_v53, %v443_v52  ;;  %v1333_v55 = vpop.f32.mrb[5].mxu0 }
 0x665   : > { %v485_v56 = vpop.f32.mrb[6].mxu0 }
 0x666   : > { %1440 = vtanh.f32 %v483_v54  ;;  %v1334_v57 = vpop.f32.mrb[7].mxu0  ;;  %v1252_v59 = vmul.f32 -1.442695, %v483_v54 }
 0x667   : > { %v662_v57 = vrot.slane %v1630_v10, 5 }
 0x668   : > { %1442 = vpow2.f32 %v1252_v59 }
 0x670   : > { %v1441_v58 = vpop.eup %1440 }
 0x671   : > { %497 = vrot.lane.b32.xlu1 %v1441_v58, %s1531_s12 }
 0x672   : > { %v1443_v60 = vpop.eup %1442 }
 0x673   : > { %v491_v61 = vadd.f32 1.0, %v1443_v60 }
 0x675   : > { %1444 = vrcp.f32 %v491_v61 }
 0x67f   : > { %v1445_v62 = vpop.eup %1444 }
 0x680   : > { %v495_v4 = vmul.f32 %v1445_v62, %v432_v46 }
 0x6e3   : > { %v498_v63 = vpop.permute.xlu1 %497 }
 0x6e4   : > { %v500_v0 = vmul.f32 %v1445_v62, %v498_v63 }
 0x6e6   : > { %502 = vrot.lane.b32.xlu0 %v500_v0, %s1531_s12 }
 0x758   : > { %v503_v5 = vpop.permute.xlu0 %502 }
 0x759   : > { %v505_v7 = vadd.f32 %v503_v5, %v495_v4 }
 0x75b   : > { %1446 = vtanh.f32 %v505_v7 }
 0x765   : > { %v1447_v8 = vpop.eup %1446 }
 0x766   : > { %508 = vrot.lane.b32.xlu1 %v1447_v8, %s1531_s12 }
 0x7d8   : > { %v509_v11 = vpop.permute.xlu1 %508 }
 0x7d9   : > { %v511_v12 = vmul.f32 %v1445_v62, %v509_v11 }
 0x7db   : > { %v512_v13 = vpack.c.bf16 %v511_v12, %v511_v12 }
 0x7dd   : > { %514 = vrot.lane.b32.xlu0 %v512_v13, %s1532_s13 }
 0x84f   : > { %v515_v14 = vpop.permute.xlu0 %514 }
 0x850   : > { %1340 = vmatmul.mubr.msk.bf16.vlgmr.msra.gmra.mrb[4].mxu1 %vm297_vm1, %v515_v14 }
 0x851   : > { %1352 = vmatpush3.bf16.msra.mxu1 %v1582_v1  ;;  %1355 = vmatprep.mubr.msk.bf16.mxu1 %vm1529_vm0, %v1528_v2 }
 0x852   : > { %1353 = vmatprep.subr.bf16.mxu1 %v1528_v2 }
 0x855   : > { %1354 = vmatpush3.bf16.msra.mxu1 %v1590_v3 }
 0x856   : > { %1367 = vmatprep.subr.bf16.mxu1 %v1528_v2 }
 0x923   : > { %v555_v16 = vpop.f32.mrb[4].mxu1 }
 0x924   : > { %v556_v17 = vadd.f32 %v555_v16, %v516_v15  ;;  %v1341_v18 = vpop.f32.mrb[5].mxu1 }
 0x925   : > { %v558_v19 = vpop.f32.mrb[6].mxu1 }
 0x926   : > { %1448 = vtanh.f32 %v556_v17  ;;  %v1342_v20 = vpop.f32.mrb[7].mxu1  ;;  %v1254_v22 = vmul.f32 -1.442695, %v556_v17 }
 0x927   : > { %v735_v20 = vrot.slane %v1630_v10, 6 }
 0x928   : > { %1450 = vpow2.f32 %v1254_v22 }
 0x930   : > { %v1449_v21 = vpop.eup %1448 }
 0x931   : > { %570 = vrot.lane.b32.xlu1 %v1449_v21, %s1531_s12 }
 0x932   : > { %v1451_v23 = vpop.eup %1450 }
 0x933   : > { %v564_v24 = vadd.f32 1.0, %v1451_v23 }
 0x935   : > { %1452 = vrcp.f32 %v564_v24 }
 0x93f   : > { %v1453_v25 = vpop.eup %1452 }
 0x940   : > { %v568_v28 = vmul.f32 %v1453_v25, %v505_v7 }
 0x9a3   : > { %v571_v26 = vpop.permute.xlu1 %570 }
 0x9a4   : > { %v573_v27 = vmul.f32 %v1453_v25, %v571_v26 }
 0x9a6   : > { %575 = vrot.lane.b32.xlu0 %v573_v27, %s1531_s12 }
 0xa18   : > { %v576_v29 = vpop.permute.xlu0 %575 }
 0xa19   : > { %v578_v30 = vadd.f32 %v576_v29, %v568_v28 }
 0xa1b   : > { %1454 = vtanh.f32 %v578_v30 }
 0xa25   : > { %v1455_v31 = vpop.eup %1454 }
 0xa26   : > { %581 = vrot.lane.b32.xlu1 %v1455_v31, %s1531_s12 }
 0xa98   : > { %v582_v32 = vpop.permute.xlu1 %581 }
 0xa99   : > { %v584_v33 = vmul.f32 %v1453_v25, %v582_v32 }
 0xa9b   : > { %v585_v34 = vpack.c.bf16 %v584_v33, %v584_v33 }
 0xa9d   : > { %587 = vrot.lane.b32.xlu0 %v585_v34, %s1532_s13 }
 0xb0f   : > { %v588_v35 = vpop.permute.xlu0 %587 }
 0xb10   : > { %1348 = vmatmul.mubr.msk.bf16.vlgmr.msra.gmra.mrb[8].mxu0 %vm297_vm1, %v588_v35 }
 0xb11   : > { %1360 = vmatpush3.bf16.msra.mxu0 %v1582_v1  ;;  %1363 = vmatprep.mubr.msk.bf16.mxu0 %vm1529_vm0, %v1528_v2 }
 0xb12   : > { %1361 = vmatprep.subr.bf16.mxu0 %v1528_v2 }
 0xb15   : > { %1362 = vmatpush3.bf16.msra.mxu0 %v1590_v3 }
 0xb16   : > { %1375 = vmatprep.subr.bf16.mxu0 %v1528_v2 }
 0xbe3   : > { %v628_v37 = vpop.f32.mrb[8].mxu0 }
 0xbe4   : > { %v629_v38 = vadd.f32 %v628_v37, %v589_v36  ;;  %v1349_v39 = vpop.f32.mrb[9].mxu0 }
 0xbe5   : > { %v631_v40 = vpop.f32.mrb[10].mxu0 }
 0xbe6   : > { %1456 = vtanh.f32 %v629_v38  ;;  %v1350_v41 = vpop.f32.mrb[11].mxu0  ;;  %v1256_v43 = vmul.f32 -1.442695, %v629_v38 }
 0xbe7   : > { %v808_v41 = vrot.slane %v1630_v10, 7 }
 0xbe8   : > { %1458 = vpow2.f32 %v1256_v43 }
 0xbf0   : > { %v1457_v42 = vpop.eup %1456 }
 0xbf1   : > { %643 = vrot.lane.b32.xlu1 %v1457_v42, %s1531_s12 }
 0xbf2   : > { %v1459_v44 = vpop.eup %1458 }
 0xbf3   : > { %v637_v45 = vadd.f32 1.0, %v1459_v44 }
 0xbf5   : > { %1460 = vrcp.f32 %v637_v45 }
 0xbff   : > { %v1461_v46 = vpop.eup %1460 }
 0xc00   : > { %v641_v49 = vmul.f32 %v1461_v46, %v578_v30 }
 0xc63   : > { %v644_v47 = vpop.permute.xlu1 %643 }
 0xc64   : > { %v646_v48 = vmul.f32 %v1461_v46, %v644_v47 }
 0xc66   : > { %648 = vrot.lane.b32.xlu0 %v646_v48, %s1531_s12 }
 0xcd8   : > { %v649_v50 = vpop.permute.xlu0 %648 }
 0xcd9   : > { %v651_v51 = vadd.f32 %v649_v50, %v641_v49 }
 0xcdb   : > { %1462 = vtanh.f32 %v651_v51 }
 0xce5   : > { %v1463_v52 = vpop.eup %1462 }
 0xce6   : > { %654 = vrot.lane.b32.xlu1 %v1463_v52, %s1531_s12 }
 0xd58   : > { %v655_v53 = vpop.permute.xlu1 %654 }
 0xd59   : > { %v657_v54 = vmul.f32 %v1461_v46, %v655_v53 }
 0xd5b   : > { %v658_v55 = vpack.c.bf16 %v657_v54, %v657_v54 }
 0xd5d   : > { %660 = vrot.lane.b32.xlu0 %v658_v55, %s1532_s13 }
 0xdcf   : > { %v661_v56 = vpop.permute.xlu0 %660 }
 0xdd0   : > { %1356 = vmatmul.mubr.msk.bf16.vlgmr.msra.gmra.mrb[8].mxu1 %vm297_vm1, %v661_v56 }
 0xdd1   : > { %1368 = vmatpush3.bf16.msra.mxu1 %v1582_v1  ;;  %1371 = vmatprep.mubr.msk.bf16.mxu1 %vm1529_vm0, %v1528_v2 }
 0xdd2   : > { %1369 = vmatprep.subr.bf16.mxu1 %v1528_v2 }
 0xdd5   : > { %1370 = vmatpush3.bf16.msra.mxu1 %v1590_v3 }
 0xdd6   : > { %1383 = vmatprep.subr.bf16.mxu1 %v1528_v2 }
 0xea3   : > { %v701_v58 = vpop.f32.mrb[8].mxu1 }
 0xea4   : > { %v702_v59 = vadd.f32 %v701_v58, %v662_v57  ;;  %v1357_v60 = vpop.f32.mrb[9].mxu1  ;;  %v252_v57 = vld [vmem:[%s1606_s7 + $0x8] sm:$0xf] }
 0xea5   : > { %v704_v61 = vpop.f32.mrb[10].mxu1 }
 0xea6   : > { %1464 = vtanh.f32 %v702_v59  ;;  %v1358_v62 = vpop.f32.mrb[11].mxu1  ;;  %v1258_v0 = vmul.f32 -1.442695, %v702_v59 }
 0xea8   : > { %1466 = vpow2.f32 %v1258_v0 }
 0xeb0   : > { %v1465_v63 = vpop.eup %1464 }
 0xeb1   : > { %716 = vrot.lane.b32.xlu1 %v1465_v63, %s1531_s12 }
 0xeb2   : > { %v1467_v4 = vpop.eup %1466 }
 0xeb3   : > { %v710_v5 = vadd.f32 1.0, %v1467_v4 }
 0xeb5   : > { %1468 = vrcp.f32 %v710_v5 }
 0xebf   : > { %v1469_v7 = vpop.eup %1468 }
 0xec0   : > { %v714_v12 = vmul.f32 %v1469_v7, %v651_v51 }
 0xf23   : > { %v717_v8 = vpop.permute.xlu1 %716 }
 0xf24   : > { %v719_v11 = vmul.f32 %v1469_v7, %v717_v8 }
 0xf26   : > { %721 = vrot.lane.b32.xlu0 %v719_v11, %s1531_s12 }
 0xf98   : > { %v722_v13 = vpop.permute.xlu0 %721 }
 0xf99   : > { %v724_v14 = vadd.f32 %v722_v13, %v714_v12 }
 0xf9b   : > { %1470 = vtanh.f32 %v724_v14 }
 0xfa5   : > { %v1471_v15 = vpop.eup %1470 }
 0xfa6   : > { %727 = vrot.lane.b32.xlu1 %v1471_v15, %s1531_s12 }
0x1018   : > { %v728_v16 = vpop.permute.xlu1 %727 }
0x1019   : > { %v730_v17 = vmul.f32 %v1469_v7, %v728_v16 }
0x101b   : > { %v731_v18 = vpack.c.bf16 %v730_v17, %v730_v17 }
0x101d   : > { %733 = vrot.lane.b32.xlu0 %v731_v18, %s1532_s13 }
0x108f   : > { %v734_v19 = vpop.permute.xlu0 %733 }
0x1090   : > { %1364 = vmatmul.mubr.msk.bf16.vlgmr.msra.gmra.mrb[12].mxu0 %vm297_vm1, %v734_v19 }
0x1091   : > { %1376 = vmatpush3.bf16.msra.mxu0 %v1582_v1  ;;  %1379 = vmatprep.mubr.msk.bf16.mxu0 %vm1529_vm0, %v1528_v2 }
0x1092   : > { %1377 = vmatprep.subr.bf16.mxu0 %v1528_v2 }
0x1095   : > { %1378 = vmatpush3.bf16.msra.mxu0 %v1590_v3 }
0x1096   : > { %1391 = vmatprep.subr.bf16.mxu0 %v1528_v2 }
0x1163   : > { %v774_v21 = vpop.f32.mrb[12].mxu0 }
0x1164   : > { %v775_v22 = vadd.f32 %v774_v21, %v735_v20  ;;  %v1365_v23 = vpop.f32.mrb[13].mxu0 }
0x1165   : > { %v777_v24 = vpop.f32.mrb[14].mxu0 }
0x1166   : > { %1472 = vtanh.f32 %v775_v22  ;;  %v1366_v25 = vpop.f32.mrb[15].mxu0  ;;  %v1260_v27 = vmul.f32 -1.442695, %v775_v22 }
0x1168   : > { %1474 = vpow2.f32 %v1260_v27 }
0x1170   : > { %v1473_v26 = vpop.eup %1472 }
0x1171   : > { %789 = vrot.lane.b32.xlu1 %v1473_v26, %s1531_s12 }
0x1172   : > { %v1475_v28 = vpop.eup %1474 }
0x1173   : > { %v783_v29 = vadd.f32 1.0, %v1475_v28 }
0x1175   : > { %1476 = vrcp.f32 %v783_v29 }
0x117f   : > { %v1477_v30 = vpop.eup %1476 }
0x1180   : > { %v787_v33 = vmul.f32 %v1477_v30, %v724_v14 }
0x11e3   : > { %v790_v31 = vpop.permute.xlu1 %789 }
0x11e4   : > { %v792_v32 = vmul.f32 %v1477_v30, %v790_v31 }
0x11e6   : > { %794 = vrot.lane.b32.xlu0 %v792_v32, %s1531_s12 }
0x1258   : > { %v795_v34 = vpop.permute.xlu0 %794 }
0x1259   : > { %v797_v35 = vadd.f32 %v795_v34, %v787_v33 }
0x125b   : > { %1478 = vtanh.f32 %v797_v35 }
0x1265   : > { %v1479_v36 = vpop.eup %1478 }
0x1266   : > { %800 = vrot.lane.b32.xlu1 %v1479_v36, %s1531_s12 }
0x12d8   : > { %v801_v37 = vpop.permute.xlu1 %800 }
0x12d9   : > { %v803_v38 = vmul.f32 %v1477_v30, %v801_v37 }
0x12db   : > { %v804_v39 = vpack.c.bf16 %v803_v38, %v803_v38 }
0x12dd   : > { %806 = vrot.lane.b32.xlu0 %v804_v39, %s1532_s13 }
0x134f   : > { %v807_v40 = vpop.permute.xlu0 %806 }
0x1350   : > { %1372 = vmatmul.mubr.msk.bf16.vlgmr.msra.gmra.mrb[12].mxu1 %vm297_vm1, %v807_v40 }
0x1351   : > { %1384 = vmatpush3.bf16.msra.mxu1 %v1582_v1  ;;  %1387 = vmatprep.mubr.msk.bf16.mxu1 %vm1529_vm0, %v1528_v2 }
0x1352   : > { %1385 = vmatprep.subr.bf16.mxu1 %v1528_v2 }
0x1355   : > { %1386 = vmatpush3.bf16.msra.mxu1 %v1590_v3 }
0x1356   : > { %1399 = vmatprep.subr.bf16.mxu1 %v1528_v2 }
0x1423   : > { %v847_v42 = vpop.f32.mrb[12].mxu1 }
0x1424   : > { %v848_v43 = vadd.f32 %v847_v42, %v808_v41  ;;  %v1373_v44 = vpop.f32.mrb[13].mxu1 }
0x1425   : > { %v850_v45 = vpop.f32.mrb[14].mxu1 }
0x1426   : > { %1480 = vtanh.f32 %v848_v43  ;;  %v1374_v46 = vpop.f32.mrb[15].mxu1  ;;  %v1262_v48 = vmul.f32 -1.442695, %v848_v43 }
0x1428   : > { %1482 = vpow2.f32 %v1262_v48 }
0x1430   : > { %v1481_v47 = vpop.eup %1480 }
0x1431   : > { %862 = vrot.lane.b32.xlu1 %v1481_v47, %s1531_s12 }
0x1432   : > { %v1483_v49 = vpop.eup %1482 }
0x1433   : > { %v856_v50 = vadd.f32 1.0, %v1483_v49 }
0x1435   : > { %1484 = vrcp.f32 %v856_v50 }
0x143f   : > { %v1485_v51 = vpop.eup %1484 }
0x1440   : > { %v860_v10 = vmul.f32 %v1485_v51, %v797_v35 }
0x14a3   : > { %v863_v52 = vpop.permute.xlu1 %862 }
0x14a4   : > { %v865_v53 = vmul.f32 %v1485_v51, %v863_v52 }
0x14a6   : > { %867 = vrot.lane.b32.xlu0 %v865_v53, %s1531_s12 }
0x1518   : > { %v868_v54 = vpop.permute.xlu0 %867 }
0x1519   : > { %v870_v55 = vadd.f32 %v868_v54, %v860_v10 }
0x151b   : > { %1486 = vtanh.f32 %v870_v55 }
0x1525   : > { %v1487_v56 = vpop.eup %1486 }
0x1526   : > { %873 = vrot.lane.b32.xlu1 %v1487_v56, %s1531_s12 }
0x152a   : > { %266 = vperm.xlu1 %1421, %v252_v57  }
0x1598   : > { %v874_v58 = vpop.permute.xlu1 %873 }
0x1599   : > { %v876_v59 = vmul.f32 %v1485_v51, %v874_v58 }
0x159b   : > { %v877_v60 = vpack.c.bf16 %v876_v59, %v876_v59 }
0x159d   : > { %879 = vrot.lane.b32.xlu0 %v877_v60, %s1532_s13 }
0x15a9   : > { %v267_v62 = vpop.permute.xlu1 %266 }
0x15aa   : > { %v276_v63 = vmul.f32 %v1621_v6, %v267_v62 }
0x15ac   : > { %v1730_v0 = vadd.f32 %v1627_v9, %v276_v63 }
0x15ae   : > { %v953_v25 = vrot.slane %v1730_v0, 1  ;;  %v1026_v43 = vrot.slane %v1730_v0, 2  ;;  %v1099_v63 = vrot.slane %v1730_v0, 3 }
0x160f   : > { %v880_v61 = vpop.permute.xlu0 %879 }
0x1610   : > { %1380 = vmatmul.mubr.msk.bf16.vlgmr.msra.gmra.mrb[16].mxu0 %vm297_vm1, %v880_v61 }
0x1611   : > { %1392 = vmatpush3.bf16.msra.mxu0 %v1582_v1  ;;  %1395 = vmatprep.mubr.msk.bf16.mxu0 %vm1529_vm0, %v1528_v2 }
0x1612   : > { %1393 = vmatprep.subr.bf16.mxu0 %v1528_v2 }
0x1615   : > { %1394 = vmatpush3.bf16.msra.mxu0 %v1590_v3 }
0x16e3   : > { %v918_v4 = vpop.f32.mrb[16].mxu0 }
0x16e4   : > { %v919_v5 = vadd.f32 %v918_v4, %v1730_v0  ;;  %v1381_v7 = vpop.f32.mrb[17].mxu0  ;;  %v1271_v0 = vld [vmem:[%s1775_s4] ss:$0 sm:$0xff] }
0x16e5   : > { %v921_v8 = vpop.f32.mrb[18].mxu0 }
0x16e6   : > { %1488 = vtanh.f32 %v919_v5  ;;  %v1382_v11 = vpop.f32.mrb[19].mxu0  ;;  %v1264_v13 = vmul.f32 -1.442695, %v919_v5 }
0x16e8   : > { %1490 = vpow2.f32 %v1264_v13 }
0x16f0   : > { %v1489_v12 = vpop.eup %1488 }
0x16f1   : > { %933 = vrot.lane.b32.xlu0 %v1489_v12, %s1531_s12 }
0x16f2   : > { %v1491_v14 = vpop.eup %1490 }
0x16f3   : > { %v927_v15 = vadd.f32 1.0, %v1491_v14 }
0x16f5   : > { %1492 = vrcp.f32 %v927_v15 }
0x16ff   : > { %v1493_v16 = vpop.eup %1492 }
0x1700   : > { %v931_v9 = vmul.f32 %v1493_v16, %v870_v55 }
0x1763   : > { %v934_v6 = vpop.permute.xlu0 %933 }
0x1764   : > { %v936_v17 = vmul.f32 %v1493_v16, %v934_v6 }
0x1766   : > { %938 = vrot.lane.b32.xlu1 %v936_v17, %s1531_s12 }
0x17d8   : > { %v939_v18 = vpop.permute.xlu1 %938 }
0x17d9   : > { %v941_v19 = vadd.f32 %v939_v18, %v931_v9 }
0x17db   : > { %1494 = vtanh.f32 %v941_v19 }
0x17e5   : > { %v1495_v20 = vpop.eup %1494 }
0x17e6   : > { %944 = vrot.lane.b32.xlu0 %v1495_v20, %s1531_s12 }
0x1858   : > { %v945_v21 = vpop.permute.xlu0 %944 }
0x1859   : > { %v947_v22 = vmul.f32 %v1493_v16, %v945_v21 }
0x185b   : > { %v948_v23 = vpack.c.bf16 %v947_v22, %v947_v22 }
0x185d   : > { %950 = vrot.lane.b32.xlu1 %v948_v23, %s1532_s13 }
0x18cf   : > { %v951_v24 = vpop.permute.xlu1 %950 }
0x18d0   : > { %1388 = vmatmul.mubr.msk.bf16.vlgmr.msra.gmra.mrb[16].mxu1 %vm297_vm1, %v951_v24 }
0x18d1   : > { %1400 = vmatpush3.bf16.msra.mxu1 %v1582_v1  ;;  %1403 = vmatprep.mubr.msk.bf16.mxu1 %vm1529_vm0, %v1528_v2 }
0x18d2   : > { %1401 = vmatprep.subr.bf16.mxu1 %v1528_v2 }
0x18d5   : > { %1402 = vmatpush3.bf16.msra.mxu1 %v1590_v3 }
0x19a3   : > { %v992_v26 = vpop.f32.mrb[16].mxu1 }
0x19a4   : > { %v993_v27 = vadd.f32 %v992_v26, %v953_v25  ;;  %v1389_v28 = vpop.f32.mrb[17].mxu1 }
0x19a5   : > { %v995_v29 = vpop.f32.mrb[18].mxu1 }
0x19a6   : > { %1496 = vtanh.f32 %v993_v27  ;;  %v1390_v30 = vpop.f32.mrb[19].mxu1  ;;  %v1266_v32 = vmul.f32 -1.442695, %v993_v27  ;;  %v1186_v27 = vld [vmem:[#allocation2] sm:$0x1] }
0x19a8   : > { %1498 = vpow2.f32 %v1266_v32 }
0x19b0   : > { %v1497_v31 = vpop.eup %1496 }
0x19b1   : > { %1007 = vrot.lane.b32.xlu0 %v1497_v31, %s1531_s12 }
0x19b2   : > { %v1499_v1 = vpop.eup %1498 }
0x19b3   : > { %v1001_v33 = vadd.f32 1.0, %v1499_v1 }
0x19b5   : > { %1500 = vrcp.f32 %v1001_v33 }
0x19bf   : > { %v1501_v34 = vpop.eup %1500 }
0x19c0   : > { %v1005_v3 = vmul.f32 %v1501_v34, %v941_v19 }
0x1a23   : > { %v1008_v2 = vpop.permute.xlu0 %1007 }
0x1a24   : > { %v1010_v35 = vmul.f32 %v1501_v34, %v1008_v2 }
0x1a26   : > { %1012 = vrot.lane.b32.xlu1 %v1010_v35, %s1531_s12 }
0x1a98   : > { %v1013_v36 = vpop.permute.xlu1 %1012 }
0x1a99   : > { %v1015_v37 = vadd.f32 %v1013_v36, %v1005_v3 }
0x1a9b   : > { %1502 = vtanh.f32 %v1015_v37 }
0x1aa5   : > { %v1503_v38 = vpop.eup %1502 }
0x1aa6   : > { %1018 = vrot.lane.b32.xlu0 %v1503_v38, %s1531_s12 }
0x1b18   : > { %v1019_v39 = vpop.permute.xlu0 %1018 }
0x1b19   : > { %v1021_v40 = vmul.f32 %v1501_v34, %v1019_v39 }
0x1b1b   : > { %v1022_v41 = vpack.c.bf16 %v1021_v40, %v1021_v40 }
0x1b1d   : > { %1024 = vrot.lane.b32.xlu1 %v1022_v41, %s1532_s13 }
0x1b8f   : > { %v1025_v42 = vpop.permute.xlu1 %1024 }
0x1b90   : > { %1396 = vmatmul.mubr.msk.bf16.vlgmr.msra.gmra.mrb[20].mxu0 %vm297_vm1, %v1025_v42 }
0x1c63   : > { %v1065_v44 = vpop.f32.mrb[20].mxu0 }
0x1c64   : > { %v1066_v45 = vadd.f32 %v1065_v44, %v1026_v43  ;;  %v1397_v46 = vpop.f32.mrb[21].mxu0 }
0x1c65   : > { %v1068_v47 = vpop.f32.mrb[22].mxu0 }
0x1c66   : > { %1504 = vtanh.f32 %v1066_v45  ;;  %v1398_v48 = vpop.f32.mrb[23].mxu0  ;;  %v1268_v50 = vmul.f32 -1.442695, %v1066_v45 }
0x1c68   : > { %1506 = vpow2.f32 %v1268_v50 }
0x1c70   : > { %v1505_v49 = vpop.eup %1504 }
0x1c71   : > { %1080 = vrot.lane.b32.xlu0 %v1505_v49, %s1531_s12 }
0x1c72   : > { %v1507_v51 = vpop.eup %1506 }
0x1c73   : > { %v1074_v52 = vadd.f32 1.0, %v1507_v51 }
0x1c75   : > { %1508 = vrcp.f32 %v1074_v52 }
0x1c7f   : > { %v1509_v53 = vpop.eup %1508 }
0x1c80   : > { %v1078_v55 = vmul.f32 %v1509_v53, %v1015_v37 }
0x1ce3   : > { %v1081_v10 = vpop.permute.xlu0 %1080 }
0x1ce4   : > { %v1083_v54 = vmul.f32 %v1509_v53, %v1081_v10 }
0x1ce6   : > { %1085 = vrot.lane.b32.xlu1 %v1083_v54, %s1531_s12 }
0x1d58   : > { %v1086_v56 = vpop.permute.xlu1 %1085 }
0x1d59   : > { %v1088_v57 = vadd.f32 %v1086_v56, %v1078_v55 }
0x1d5b   : > { %1510 = vtanh.f32 %v1088_v57 }
0x1d65   : > { %v1511_v58 = vpop.eup %1510 }
0x1d66   : > { %1091 = vrot.lane.b32.xlu0 %v1511_v58, %s1531_s12 }
0x1dd8   : > { %v1092_v59 = vpop.permute.xlu0 %1091 }
0x1dd9   : > { %v1094_v60 = vmul.f32 %v1509_v53, %v1092_v59 }
0x1ddb   : > { %v1095_v61 = vpack.c.bf16 %v1094_v60, %v1094_v60 }
0x1ddd   : > { %1097 = vrot.lane.b32.xlu1 %v1095_v61, %s1532_s13 }
0x1e4f   : > { %v1098_v62 = vpop.permute.xlu1 %1097 }
0x1e50   : > { %1404 = vmatmul.mubr.msk.bf16.vlgmr.msra.gmra.mrb[20].mxu1 %vm297_vm1, %v1098_v62 }
0x1f23   : > { %v1138_v4 = vpop.f32.mrb[20].mxu1 }
0x1f24   : > { %v1139_v5 = vadd.f32 %v1138_v4, %v1099_v63  ;;  %v1405_v7 = vpop.f32.mrb[21].mxu1 }
0x1f25   : > { %v1141_v8 = vpop.f32.mrb[22].mxu1 }
0x1f26   : > { %1512 = vtanh.f32 %v1139_v5  ;;  %v1406_v11 = vpop.f32.mrb[23].mxu1  ;;  %v1270_v13 = vmul.f32 -1.442695, %v1139_v5 }
0x1f28   : > { %1514 = vpow2.f32 %v1270_v13 }
0x1f30   : > { %v1513_v12 = vpop.eup %1512 }
0x1f31   : > { %1153 = vrot.lane.b32.xlu0 %v1513_v12, %s1531_s12 }
0x1f32   : > { %v1515_v14 = vpop.eup %1514 }
0x1f33   : > { %v1147_v15 = vadd.f32 1.0, %v1515_v14 }
0x1f35   : > { %1516 = vrcp.f32 %v1147_v15 }
0x1f3f   : > { %v1517_v16 = vpop.eup %1516 }
0x1f40   : > { %v1151_v9 = vmul.f32 %v1517_v16, %v1088_v57 }
0x1fa3   : > { %v1154_v6 = vpop.permute.xlu0 %1153 }
0x1fa4   : > { %v1156_v17 = vmul.f32 %v1517_v16, %v1154_v6 }
0x1fa6   : > { %1158 = vrot.lane.b32.xlu1 %v1156_v17, %s1531_s12 }
0x1faa   : > { %1174 = vrot.lane.b32.xlu1 %v1271_v0, %s1532_s13 }
0x2018   : > { %v1159_v18 = vpop.permute.xlu1 %1158 }
0x2019   : > { %v1161_v19 = vadd.f32 %v1159_v18, %v1151_v9 }
0x201b   : > { %1518 = vtanh.f32 %v1161_v19 }
0x201c   : > { %v1175_v22 = vpop.permute.xlu1 %1174 }
0x2025   : > { %v1519_v20 = vpop.eup %1518 }
0x2026   : > { %1164 = vrot.lane.b32.xlu0 %v1519_v20, %s1531_s12 }
0x2098   : > { %v1165_v21 = vpop.permute.xlu0 %1164 }
0x2099   : > { %v1167_v23 = vmul.f32 %v1517_v16, %v1165_v21 }
0x209b   : > { %v1177_v24 = vmul.f32 %v1175_v22, %v1167_v23 }
0x209d   : > { %1179 = vrot.lane.b32.xlu0 %v1177_v24, %s1532_s13 }
0x210f   : > { %v1180_v25 = vpop.permute.xlu0 %1179 }
0x2110   : > { %v1183_v26 = vsel %vm1182_vm2, %v1180_v25, 0.0 }
0x2111   : > { %1184 = vadd.xlane.f32.xlu1 %v1183_v26 }
0x219e   : > { %v1185_v28 = vpop.xlane.xlu1 %1184 }
0x219f   : > { %v1187_v29 = vadd.f32 %v1186_v27, %v1185_v28 }
0x21a1   : > { %1189 = vst.msk [vmem:[%s249_s18] sm:$0x1] %vm1188_vm3, %v1187_v29 }
0x21a2 PF: > { %s18_s23 = sadd.s32 1, %s1526_s23  }
0x21a3   : > { %p15_p4 = scmp.ge.s32.totalorder %s18_s23, 10  }
0x21a5   :  { %17 = sbr.rel (!%p15_p4) target bundleno = 3 (0x3), region = 74 }

</bundles_post_ra>
